<compile_context>
chip_gen: v7x
topology: tpu7x:2x2x1
jax: 0.10.0
libtpu: 0.0.40
codegen_flags: <defaults>
</compile_context>

<pallas_src>
import functools

import jax
import jax.numpy as jnp
from jax.experimental import pallas as pl
from jax.experimental.pallas import tpu as pltpu

LEAKY_SLOPE = 0.05          # matches nn.LeakyReLU(0.05) in the module
BN_EPS = 1e-5


# ---------------------------------------------------------------- kernel ----
def _make_kernel(num_conv, growth, odim, K):
    HTOT = num_conv * growth
    F = HTOT + odim                      # packed pre-activation width

    def kernel(x_ref, knn_ref, wk_ref, wx_ref, b_ref, wfwd_ref, out_ref):
        TM = x_ref.shape[0]

        knn = knn_ref[...]               # (TM*K, C)  bf16 gathered neighbors
        x = x_ref[...]                   # (TM, C)    bf16 center points
        wk = wk_ref[...]                 # (C, F)     bf16
        wx = wx_ref[...]                 # (C, F)     bf16
        b = b_ref[...]                   # (1, F)     f32

        # One fused base matmul: every layer's folded edge-feature contribution.
        base_k = jnp.dot(knn, wk, preferred_element_type=jnp.float32)     # (TM*K, F)
        base_x = jnp.dot(x, wx, preferred_element_type=jnp.float32) + b   # (TM, F)
        base_x = jnp.broadcast_to(base_x[:, None, :], (TM, K, F)).reshape(TM * K, F)
        p = base_k + base_x              # fixed-width f32 pre-activation accumulator

        # Densenet chain: activate layer i's slot, push its contribution to all
        # later layers + conv_out with one small (G, F) matmul (zero-padded).
        for i in range(num_conv):
            h = p[:, i * growth:(i + 1) * growth]
            h = jnp.maximum(h, LEAKY_SLOPE * h)                  # LeakyReLU(0.05)
            p = p + jnp.dot(h.astype(jnp.bfloat16), wfwd_ref[i],
                            preferred_element_type=jnp.float32)

        o = p[:, HTOT:].reshape(TM, K, odim)
        # TODO(synk): a points-on-lanes (transposed) output layout would make this a
        # lane-dense unmasked store; kept (tm, odim) orientation for simplicity.
        out_ref[...] = jnp.max(o, axis=1).astype(out_ref.dtype)  # max-pool over K

    return kernel


# ------------------------------------------------------- host weight prep ----
def _round_up(v, m):
    return ((v + m - 1) // m) * m


def _pack_params(params, idim, growth, odim):
    """Fold edge-feature construction + densenet wiring into dense weight slabs."""
    C = idim
    num_conv = len(params) - 1
    HTOT = num_conv * growth
    F = HTOT + odim

    wk = jnp.zeros((C, F), jnp.float32)       # acts on gathered neighbor features
    wx = jnp.zeros((C, F), jnp.float32)       # acts on the (broadcast) center point
    bias = jnp.zeros((1, F), jnp.float32)
    wfwd = jnp.zeros((num_conv, growth, F), jnp.float32)   # h_i -> later layers / out

    def split(w):
        # input-channel rows: [x_tiled (C), knn (C), knn - x_tiled (C), h_0 ...]
        return w[C:2 * C] + w[2 * C:3 * C], w[0:C] - w[2 * C:3 * C]

    for j in range(num_conv):
        w, b = params[j]
        col = slice(j * growth, (j + 1) * growth)
        k_part, x_part = split(w)
        wk = wk.at[:, col].set(k_part)
        wx = wx.at[:, col].set(x_part)
        bias = bias.at[0, col].set(b)
        for i in range(j):
            wfwd = wfwd.at[i, :, col].set(
                w[3 * C + i * growth:3 * C + (i + 1) * growth])

    w_out, b_out = params[-1]
    col = slice(HTOT, F)
    k_part, x_part = split(w_out)
    wk = wk.at[:, col].set(k_part)
    wx = wx.at[:, col].set(x_part)
    bias = bias.at[0, col].set(b_out)
    for i in range(num_conv):
        wfwd = wfwd.at[i, :, col].set(
            w_out[3 * C + i * growth:3 * C + (i + 1) * growth])
    return wk, wx, bias, wfwd


# --------------------------------------------------------------- wrapper ----
def feature_extraction_pallas(x, knn_idx, params, odim, growth, tm=256):
    """x: [B, N, C] f32, knn_idx: [B, N, K] int32 -> [B, N, odim] f32."""
    B, N, C = x.shape
    K = knn_idx.shape[-1]
    M = B * N
    num_conv = len(params) - 1

    # TODO(synk): knn gather stays in the XLA wrapper; an in-kernel gather
    # (scalar-prefetched indices + DMA gather) would avoid round-tripping the
    # K-duplicated neighbor tensor through HBM.
    knn_feat = jax.vmap(lambda pts, idx: pts[idx])(x, knn_idx)       # [B, N, K, C]

    # Tile size: big tiles amortize per-step overhead, but keep >= 2 grid steps
    # when possible (v7x has 2 TensorCores sharded over "parallel" grid axes).
    tm_eff = min(tm, max(16, _round_up(-(-M // 2), 16)))
    M_pad = _round_up(M, tm_eff)
    pad = M_pad - M

    x_flat = x.reshape(M, C)
    knn2d = knn_feat.reshape(M * K, C)
    if pad:
        x_flat = jnp.pad(x_flat, ((0, pad), (0, 0)))
        knn2d = jnp.pad(knn2d, ((0, pad * K), (0, 0)))

    # bf16 matmul inputs (f32 accumulation in-kernel) — halves HBM/DMA bytes.
    x_bf = x_flat.astype(jnp.bfloat16)
    knn_bf = knn2d.astype(jnp.bfloat16)
    wk, wx, bias, wfwd = _pack_params(params, C, growth, odim)
    wk_bf = wk.astype(jnp.bfloat16)
    wx_bf = wx.astype(jnp.bfloat16)
    wfwd_bf = wfwd.astype(jnp.bfloat16)

    out = pl.pallas_call(
        _make_kernel(num_conv, growth, odim, K),
        out_shape=jax.ShapeDtypeStruct((M_pad, odim), jnp.float32),
        grid_spec=pltpu.PrefetchScalarGridSpec(
            num_scalar_prefetch=0,
            grid=(M_pad // tm_eff,),
            in_specs=[
                pl.BlockSpec((tm_eff, C), lambda i: (i, 0)),
                pl.BlockSpec((tm_eff * K, C), lambda i: (i, 0)),
                pl.BlockSpec(wk_bf.shape, lambda i: (0, 0)),
                pl.BlockSpec(wx_bf.shape, lambda i: (0, 0)),
                pl.BlockSpec(bias.shape, lambda i: (0, 0)),
                pl.BlockSpec(wfwd_bf.shape, lambda i: (0, 0, 0)),
            ],
            out_specs=pl.BlockSpec((tm_eff, odim), lambda i: (i, 0)),
        ),
        compiler_params=pltpu.CompilerParams(
            dimension_semantics=("parallel",),
            vmem_limit_bytes=32 * 1024 * 1024,
        ),
    )(x_bf, knn_bf, wk_bf, wx_bf, bias, wfwd_bf)

    return out[:M].reshape(B, N, odim)


# ------------------------------------------------------ parameter set-up ----
def init_params(key, idim, odim, growth_width):
    """Deterministic init; BN (eval-mode) is folded into each conv."""
    idim3 = idim * 3
    assert odim % growth_width == 0
    num_conv = odim // growth_width
    params = []
    for i in range(num_conv):
        cin = idim3 + growth_width * i
        key, k1, k2, k3, k4, k5, k6 = jax.random.split(key, 7)
        w = 0.1 * jax.random.normal(k1, (cin, growth_width), jnp.float32)
        b = 0.1 * jax.random.normal(k2, (growth_width,), jnp.float32)
        gamma = 1.0 + 0.1 * jax.random.normal(k3, (growth_width,), jnp.float32)
        beta = 0.1 * jax.random.normal(k4, (growth_width,), jnp.float32)
        mean = 0.1 * jax.random.normal(k5, (growth_width,), jnp.float32)
        var = 0.5 + 0.1 * jnp.abs(jax.random.normal(k6, (growth_width,), jnp.float32))
        # TODO(synk): BN folded with fixed (eval-mode) statistics; training-mode
        # batch statistics are not reproduced here.
        scale = gamma / jnp.sqrt(var + BN_EPS)
        params.append((w * scale[None, :], (b - mean) * scale + beta))
    cin_out = idim3 + growth_width * num_conv
    key, k1, k2 = jax.random.split(key, 3)
    w_out = 0.1 * jax.random.normal(k1, (cin_out, odim), jnp.float32)
    b_out = 0.1 * jax.random.normal(k2, (odim,), jnp.float32)
    params.append((w_out, b_out))
    return params


def knn_indices(x, k):
    """Dynamic KNN (glue, mirrors pytorch3d knn_points incl. self-match)."""
    d2 = jnp.sum((x[:, :, None, :] - x[:, None, :, :]) ** 2, axis=-1)
    _, idx = jax.lax.top_k(-d2, k)
    return idx.astype(jnp.int32)


# ------------------------------------------------------------- reference ----
def reference(x, knn_idx, params):
    knn_feat = jax.vmap(lambda pts, idx: pts[idx])(x, knn_idx)
    x_t = jnp.broadcast_to(x[:, :, None, :], knn_feat.shape)
    f = jnp.concatenate([x_t, knn_feat, knn_feat - x_t], axis=-1)
    for w, b in params[:-1]:
        h = f @ w + b
        h = jnp.where(h > 0, h, LEAKY_SLOPE * h)
        f = jnp.concatenate([f, h], axis=-1)
    w, b = params[-1]
    o = f @ w + b                      # [B, N, K, odim]
    return jnp.max(o, axis=2)          # [B, N, odim]


# ------------------------------------------------------------------ main ----
if __name__ == "__main__":
    # module config: idim=4, odim=32, k=8, growth_width=8, is_dynamic=True
    B, N, idim, odim, growth, k = 2, 16, 4, 32, 8, 8

    key = jax.random.PRNGKey(0)
    key, kx, kp = jax.random.split(key, 3)
    x = jax.random.normal(kx, (B, N, idim), jnp.float32)
    params = init_params(kp, idim, odim, growth)

    run = jax.jit(functools.partial(feature_extraction_pallas,
                                    odim=odim, growth=growth, tm=256))

    knn_idx = knn_indices(x, k)                            # is_dynamic path
    out = jax.block_until_ready(run(x, knn_idx, params))
    ref = reference(x, knn_idx, params)
    assert out.shape == (B, N, odim)
    # bf16 matmul inputs / f32 accumulation -> mixed-precision tolerance
    assert jnp.allclose(out, ref, atol=2e-2, rtol=2e-2), \
        float(jnp.max(jnp.abs(out - ref)))

    # second shape: M not a multiple of the tile -> exercises padding + 2-step grid
    key, kx2 = jax.random.split(key)
    x2 = jax.random.normal(kx2, (2, 50, idim), jnp.float32)
    idx2 = knn_indices(x2, k)
    out2 = jax.block_until_ready(run(x2, idx2, params))
    ref2 = reference(x2, idx2, params)
    assert out2.shape == (2, 50, odim)
    assert jnp.allclose(out2, ref2, atol=2e-2, rtol=2e-2), \
        float(jnp.max(jnp.abs(out2 - ref2)))

    print("KERNEL_OK")
</pallas_src>

<mosaic_0001>
module attributes {stable_mosaic.version = 11 : i64} {
  func.func @kernel(%arg0: i32, %arg1: memref<16x4xbf16, #tpu.memory_space<vmem>>, %arg2: memref<128x4xbf16, #tpu.memory_space<vmem>>, %arg3: memref<4x64xbf16, #tpu.memory_space<vmem>>, %arg4: memref<4x64xbf16, #tpu.memory_space<vmem>>, %arg5: memref<1x64xf32, #tpu.memory_space<vmem>>, %arg6: memref<4x8x64xbf16, #tpu.memory_space<vmem>>, %arg7: memref<16x32xf32, #tpu.memory_space<vmem>>) attributes {dimension_semantics = [#tpu.dimension_semantics<parallel>], iteration_bounds = array<i64: 2>, scalar_prefetch = 0 : i64, scratch_operands = 0 : i64, tpu.core_type = #tpu.core_type<tc>, window_params = [{transform_indices = @transform_0, window_bounds = array<i64: 16, 4>}, {transform_indices = @transform_1, window_bounds = array<i64: 128, 4>}, {pipeline_mode = #tpu.pipeline_mode<synchronous>, transform_indices = @transform_2, window_bounds = array<i64: 4, 64>}, {pipeline_mode = #tpu.pipeline_mode<synchronous>, transform_indices = @transform_3, window_bounds = array<i64: 4, 64>}, {pipeline_mode = #tpu.pipeline_mode<synchronous>, transform_indices = @transform_4, window_bounds = array<i64: 1, 64>}, {pipeline_mode = #tpu.pipeline_mode<synchronous>, transform_indices = @transform_5, window_bounds = array<i64: 4, 8, 64>}, {transform_indices = @transform_6, window_bounds = array<i64: 16, 32>}]} {
    %c0 = arith.constant 0 : index
    %c0_0 = arith.constant 0 : index
    %0 = vector.load %arg2[%c0, %c0_0] : memref<128x4xbf16, #tpu.memory_space<vmem>>, vector<128x4xbf16>
    %c0_1 = arith.constant 0 : index
    %c0_2 = arith.constant 0 : index
    %1 = vector.load %arg1[%c0_1, %c0_2] : memref<16x4xbf16, #tpu.memory_space<vmem>>, vector<16x4xbf16>
    %c0_3 = arith.constant 0 : index
    %c0_4 = arith.constant 0 : index
    %2 = vector.load %arg3[%c0_3, %c0_4] : memref<4x64xbf16, #tpu.memory_space<vmem>>, vector<4x64xbf16>
    %c0_5 = arith.constant 0 : index
    %c0_6 = arith.constant 0 : index
    %3 = vector.load %arg4[%c0_5, %c0_6] : memref<4x64xbf16, #tpu.memory_space<vmem>>, vector<4x64xbf16>
    %c0_7 = arith.constant 0 : index
    %c0_8 = arith.constant 0 : index
    %4 = vector.load %arg5[%c0_7, %c0_8] : memref<1x64xf32, #tpu.memory_space<vmem>>, vector<1x64xf32>
    %cst = arith.constant dense<0.000000e+00> : vector<128x64xf32>
    %5 = tpu.matmul %0, %2, %cst {dimension_numbers = #tpu.dot_dimension_numbers<[1], [0], [0], [1], [0, 0, 1, 1], [], []>} : vector<128x4xbf16>, vector<4x64xbf16>, vector<128x64xf32> -> vector<128x64xf32>
    %cst_9 = arith.constant dense<0.000000e+00> : vector<16x64xf32>
    %6 = tpu.matmul %1, %3, %cst_9 {dimension_numbers = #tpu.dot_dimension_numbers<[1], [0], [0], [1], [0, 0, 1, 1], [], []>} : vector<16x4xbf16>, vector<4x64xbf16>, vector<16x64xf32> -> vector<16x64xf32>
    %7 = vector.broadcast %4 : vector<1x64xf32> to vector<16x64xf32>
    %8 = arith.addf %6, %7 : vector<16x64xf32>
    %9 = vector.shape_cast %8 : vector<16x64xf32> to vector<16x1x64xf32>
    %10 = vector.shape_cast %9 : vector<16x1x64xf32> to vector<16x1x64xf32>
    %11 = vector.broadcast %10 : vector<16x1x64xf32> to vector<16x8x64xf32>
    %12 = vector.shape_cast %11 : vector<16x8x64xf32> to vector<128x64xf32>
    %13 = arith.addf %5, %12 : vector<128x64xf32>
    %14 = vector.extract_strided_slice %13 {offsets = [0, 0], sizes = [128, 8], strides = [1, 1]} : vector<128x64xf32> to vector<128x8xf32>
    %cst_10 = arith.constant 5.000000e-02 : f32
    %15 = vector.broadcast %cst_10 : f32 to vector<128x8xf32>
    %16 = arith.mulf %15, %14 : vector<128x8xf32>
    %17 = arith.maximumf %14, %16 : vector<128x8xf32>
    %18 = arith.truncf %17 : vector<128x8xf32> to vector<128x8xbf16>
    %c0_11 = arith.constant 0 : index
    %c0_12 = arith.constant 0 : index
    %c0_13 = arith.constant 0 : index
    %19 = vector.load %arg6[%c0_11, %c0_12, %c0_13] : memref<4x8x64xbf16, #tpu.memory_space<vmem>>, vector<1x8x64xbf16>
    %20 = vector.shape_cast %19 : vector<1x8x64xbf16> to vector<8x64xbf16>
    %cst_14 = arith.constant dense<0.000000e+00> : vector<128x64xf32>
    %21 = tpu.matmul %18, %20, %cst_14 {dimension_numbers = #tpu.dot_dimension_numbers<[1], [0], [0], [1], [0, 0, 1, 1], [], []>} : vector<128x8xbf16>, vector<8x64xbf16>, vector<128x64xf32> -> vector<128x64xf32>
    %22 = arith.addf %13, %21 : vector<128x64xf32>
    %23 = vector.extract_strided_slice %22 {offsets = [0, 8], sizes = [128, 8], strides = [1, 1]} : vector<128x64xf32> to vector<128x8xf32>
    %cst_15 = arith.constant 5.000000e-02 : f32
    %24 = vector.broadcast %cst_15 : f32 to vector<128x8xf32>
    %25 = arith.mulf %24, %23 : vector<128x8xf32>
    %26 = arith.maximumf %23, %25 : vector<128x8xf32>
    %27 = arith.truncf %26 : vector<128x8xf32> to vector<128x8xbf16>
    %c1 = arith.constant 1 : index
    %c0_16 = arith.constant 0 : index
    %c0_17 = arith.constant 0 : index
    %28 = vector.load %arg6[%c1, %c0_16, %c0_17] : memref<4x8x64xbf16, #tpu.memory_space<vmem>>, vector<1x8x64xbf16>
    %29 = vector.shape_cast %28 : vector<1x8x64xbf16> to vector<8x64xbf16>
    %cst_18 = arith.constant dense<0.000000e+00> : vector<128x64xf32>
    %30 = tpu.matmul %27, %29, %cst_18 {dimension_numbers = #tpu.dot_dimension_numbers<[1], [0], [0], [1], [0, 0, 1, 1], [], []>} : vector<128x8xbf16>, vector<8x64xbf16>, vector<128x64xf32> -> vector<128x64xf32>
    %31 = arith.addf %22, %30 : vector<128x64xf32>
    %32 = vector.extract_strided_slice %31 {offsets = [0, 16], sizes = [128, 8], strides = [1, 1]} : vector<128x64xf32> to vector<128x8xf32>
    %cst_19 = arith.constant 5.000000e-02 : f32
    %33 = vector.broadcast %cst_19 : f32 to vector<128x8xf32>
    %34 = arith.mulf %33, %32 : vector<128x8xf32>
    %35 = arith.maximumf %32, %34 : vector<128x8xf32>
    %36 = arith.truncf %35 : vector<128x8xf32> to vector<128x8xbf16>
    %c2 = arith.constant 2 : index
    %c0_20 = arith.constant 0 : index
    %c0_21 = arith.constant 0 : index
    %37 = vector.load %arg6[%c2, %c0_20, %c0_21] : memref<4x8x64xbf16, #tpu.memory_space<vmem>>, vector<1x8x64xbf16>
    %38 = vector.shape_cast %37 : vector<1x8x64xbf16> to vector<8x64xbf16>
    %cst_22 = arith.constant dense<0.000000e+00> : vector<128x64xf32>
    %39 = tpu.matmul %36, %38, %cst_22 {dimension_numbers = #tpu.dot_dimension_numbers<[1], [0], [0], [1], [0, 0, 1, 1], [], []>} : vector<128x8xbf16>, vector<8x64xbf16>, vector<128x64xf32> -> vector<128x64xf32>
    %40 = arith.addf %31, %39 : vector<128x64xf32>
    %41 = vector.extract_strided_slice %40 {offsets = [0, 24], sizes = [128, 8], strides = [1, 1]} : vector<128x64xf32> to vector<128x8xf32>
    %cst_23 = arith.constant 5.000000e-02 : f32
    %42 = vector.broadcast %cst_23 : f32 to vector<128x8xf32>
    %43 = arith.mulf %42, %41 : vector<128x8xf32>
    %44 = arith.maximumf %41, %43 : vector<128x8xf32>
    %45 = arith.truncf %44 : vector<128x8xf32> to vector<128x8xbf16>
    %c3 = arith.constant 3 : index
    %c0_24 = arith.constant 0 : index
    %c0_25 = arith.constant 0 : index
    %46 = vector.load %arg6[%c3, %c0_24, %c0_25] : memref<4x8x64xbf16, #tpu.memory_space<vmem>>, vector<1x8x64xbf16>
    %47 = vector.shape_cast %46 : vector<1x8x64xbf16> to vector<8x64xbf16>
    %cst_26 = arith.constant dense<0.000000e+00> : vector<128x64xf32>
    %48 = tpu.matmul %45, %47, %cst_26 {dimension_numbers = #tpu.dot_dimension_numbers<[1], [0], [0], [1], [0, 0, 1, 1], [], []>} : vector<128x8xbf16>, vector<8x64xbf16>, vector<128x64xf32> -> vector<128x64xf32>
    %49 = arith.addf %40, %48 : vector<128x64xf32>
    %50 = vector.extract_strided_slice %49 {offsets = [0, 32], sizes = [128, 32], strides = [1, 1]} : vector<128x64xf32> to vector<128x32xf32>
    %51 = vector.shape_cast %50 : vector<128x32xf32> to vector<16x8x32xf32>
    %cst_27 = arith.constant dense<0xFF800000> : vector<16x32xf32>
    %52 = vector.multi_reduction <maximumf>, %51, %cst_27 [1] : vector<16x8x32xf32> to vector<16x32xf32>
    %c0_28 = arith.constant 0 : index
    %c0_29 = arith.constant 0 : index
    %53 = vector.load %arg7[%c0_28, %c0_29] : memref<16x32xf32, #tpu.memory_space<vmem>>, vector<16x32xf32>
    tpu.vector_store %arg7[%c0_28, %c0_29], %52 {strides = array<i32>} : memref<16x32xf32, #tpu.memory_space<vmem>>, vector<16x32xf32>,
    return
  }
  func.func @transform_0(%arg0: i32) -> (i32, i32) {
    %c0_i32 = arith.constant 0 : i32
    %c0_i32_0 = arith.constant 0 : i32
    return %arg0, %c0_i32 : i32, i32
  }
  func.func @transform_1(%arg0: i32) -> (i32, i32) {
    %c0_i32 = arith.constant 0 : i32
    %c0_i32_0 = arith.constant 0 : i32
    return %arg0, %c0_i32 : i32, i32
  }
  func.func @transform_2(%arg0: i32) -> (i32, i32) {
    %c0_i32 = arith.constant 0 : i32
    %c0_i32_0 = arith.constant 0 : i32
    %c0_i32_1 = arith.constant 0 : i32
    return %c0_i32, %c0_i32_0 : i32, i32
  }
  func.func @transform_3(%arg0: i32) -> (i32, i32) {
    %c0_i32 = arith.constant 0 : i32
    %c0_i32_0 = arith.constant 0 : i32
    %c0_i32_1 = arith.constant 0 : i32
    return %c0_i32, %c0_i32_0 : i32, i32
  }
  func.func @transform_4(%arg0: i32) -> (i32, i32) {
    %c0_i32 = arith.constant 0 : i32
    %c0_i32_0 = arith.constant 0 : i32
    %c0_i32_1 = arith.constant 0 : i32
    return %c0_i32, %c0_i32_0 : i32, i32
  }
  func.func @transform_5(%arg0: i32) -> (i32, i32, i32) {
    %c0_i32 = arith.constant 0 : i32
    %c0_i32_0 = arith.constant 0 : i32
    %c0_i32_1 = arith.constant 0 : i32
    %c0_i32_2 = arith.constant 0 : i32
    return %c0_i32, %c0_i32_0, %c0_i32_1 : i32, i32, i32
  }
  func.func @transform_6(%arg0: i32) -> (i32, i32) {
    %c0_i32 = arith.constant 0 : i32
    %c0_i32_0 = arith.constant 0 : i32
    return %arg0, %c0_i32 : i32, i32
  }
}

</mosaic_0001>

<bundles_post_ra>
// kernel: feature_extraction_pallas.1
= control target key start
LH: loop header
LB: loop body
LE: loop exit
PB: predicated region body
PF: predicated region fallthrough
CT: control target
= control target key end

     0   :  { %11 = vsyncpa [#allocation3], 0  ;;  %s2721_s0 = inlined_call_operand.vmem [shape: bf16[32,4], index: 0, kind: input, shape index: {}]   ;;  %s2722_s1 = inlined_call_operand.vmem [shape: bf16[256,4], index: 1, kind: input, shape index: {}]   ;;  %s2723_s2 = inlined_call_operand.vmem [shape: bf16[4,64], index: 2, kind: input, shape index: {}]   ;;  %s2724_s3 = inlined_call_operand.vmem [shape: bf16[4,64], index: 3, kind: input, shape index: {}]   ;;  %s2725_s4 = inlined_call_operand.vmem [shape: f32[1,64], index: 4, kind: input, shape index: {}]   ;;  %s2726_s5 = inlined_call_operand.vmem [shape: bf16[4,8,64], index: 5, kind: input, shape index: {}]   ;;  %s2727_s6 = inlined_call_operand.hbm [shape: f32[32,32], index: 6, kind: output, shape index: {}]  }
   0x1   :  { %13 = vsyncpa [#allocation3 + $0x1], 0  ;;  %s2135_s21 = smov 0   ;;  %s2137_s22 = smov 0  }
   0x2   :  { %s2139_s23 = smov 0   ;;  %s2141_s24 = smov 0  }
   0x3 LB: > { %s2156_s25 = sadd.s32 4294967295, %s2088_s24   ;;  %s1749_s26 = sadd.s32 4294967294, %s2088_s24   ;;  %s2088_s24 = sphi %s2141_s24, %s2733_s24   ;;  %s2084_s23 = sphi %s2139_s23, %s2732_s23   ;;  %s2080_s22 = sphi %s2137_s22, %s2731_s22   ;;  %s2076_s21 = sphi %s2135_s21, %s2730_s21  }
   0x4   : > { %s2160_s27 = sadd.s32 1, %s2088_s24   ;;  %s162_s28 = sadd.s32 1, %s2084_s23 }
   0x5   : > { %s159_s29 = ssub.s32 %s2088_s24, %s2160_s27  ;;  %p172_p0 = scmp.ne.s32.totalorder %s2084_s23, %s2080_s22 }
   0x6   : > { %p160_p1 = scmp.eq.s32.totalorder %s159_s29, 0  ;;  %p173_p2 = scmp.eq.s32.totalorder %s2156_s25, 1 }
   0x7   : > { %p178_p3 = scmp.ne.s32.totalorder %s2080_s22, %s2076_s21  ;;  %p179_p4 = scmp.eq.s32.totalorder %s1749_s26, 1 }
   0x8   : > { %s2171_s30 = scalar_select %p160_p1, %s2084_s23, %s162_s28  }
   0x9   : > { %p2173_p5 = por %p173_p2, %p172_p0  ;;  %p2177_p6 = por %p179_p4, %p178_p3 }
   0xa   : > { %p1752_p7 = scmp.ge.s32.totalorder %s2088_s24, 1  ;;  %p227_p8 = scmp.lt.s32.totalorder %s2088_s24, 3 }
   0xc   : > { %p228_p9 = pnand %p1752_p7, %p227_p8 }
   0xd   : > { %v295_v0 = vld [vmem:[%s2724_s3] sm:$0x3] (!%p228_p9)  ;;  %vm312_vm0 = vcmask (!%p228_p9), 1041408   ;;  %v2090_v2 = vmov (!%p228_p9), 0.0   ;;  %s1754_s13 = sshll.u32 (!%p228_p9), %s2156_s25, 1  ;;  %s1756_s14 = sshll.u32 (!%p228_p9), %s2156_s25, 4  ;;  %v363_v18 = vlaneseq (!%p228_p9) }
   0xe   : > { %231 = sbr.rel (%p228_p9) target bundleno = 1670 (0x686), region = 44  ;;  %v294_v1 = vld [vmem:[%s2723_s2] sm:$0x3] (!%p228_p9)  ;;  %1865 = vmatprep.subr.bf16.mxu0 (!%p228_p9), %v2090_v2  ;;  %v314_v3 = vsel (!%p228_p9), %vm312_vm0, %v295_v0, 0  ;;  %p263_p10 = scmp.lt.s32.totalorder (!%p228_p9), %s1754_s13, 3  ;;  %vm2091_vm1 = vmmov (!%p228_p9), 0  }
   0xf   : > { %1964 = vmatprep.subr.msk.bf16.mxu1 (!%p228_p9), %vm312_vm0, %v294_v1  ;;  %v602_v4 = vsel (!%p228_p9), %vm312_vm0, %v294_v1, 0  ;;  %1866 = vmatpush3.bf16.msra.mxu0 (!%p228_p9), %v314_v3  ;;  %p269_p11 = scmp.lt.s32.totalorder (!%p228_p9), %s1756_s14, 31  ;;  %vm308_vm2 = vcmask (!%p228_p9), 31744   ;;  %v741_v14 = vld [vmem:[%s2726_s5] sm:$0xf] (!%p228_p9)  ;;  %vm767_vm3 = vcmask (!%p228_p9), 1043456  }
  0x10   : > { %1962 = vmatpush3.bf16.msra.mxu1 (!%p228_p9), %v602_v4  ;;  %1867 = vmatprep.mubr.msk.bf16.mxu0 (!%p228_p9), %vm2091_vm1, %v2090_v2  ;;  %v769_v15 = vsel (!%p228_p9), %vm767_vm3, %v741_v14, 0  ;;  %v2092_v16 = vmov (!%p228_p9), 1966171168   ;;  %v364_v20 = vshrl.u32 (!%p228_p9), %v363_v18, 7  ;;  %v1758_v21 = vld [vmem:[%s2725_s4] ss:$0 sm:$0xff] (!%p228_p9) }
  0x11   : > { %1963 = vmatprep.subr.msk.bf16.mxu0 (!%p228_p9), %vm312_vm0, %v294_v1  ;;  %v361_v17 = vunpack.c.l.s4 (!%p228_p9), %v2092_v16  ;;  %vm742_vm4 = vcmask (!%p228_p9), 64512   ;;  %s2094_s17 = smov (!%p228_p9), 112   ;;  %s2095_s20 = smov (!%p228_p9), 104   ;;  %vm1502_vm5 = vcmask (!%p228_p9), 523520   ;;  %vm1631_vm6 = vcmask (!%p228_p9), 1041409  }
  0x12   : > { %v2217_v33 = vsub.s32 (!%p228_p9), 0, %v364_v20  ;;  %vm1633_vm7 = vcmask (!%p228_p9), 1042434   ;;  %vm1635_vm8 = vcmask (!%p228_p9), 1043459   ;;  %vm1637_vm9 = vcmask (!%p228_p9), 1044484   ;;  %s2096_s26 = smov (!%p228_p9), 96   ;;  %s1817_s11 = sshll.u32 (!%p228_p9), %s2156_s25, 8 }
  0x13   : > { %v362_v19 = vunpack.c.0.s8 (!%p228_p9), %v361_v17  ;;  %vm1639_vm10 = vcmask (!%p228_p9), 1045509   ;;  %vm1641_vm11 = vcmask (!%p228_p9), 1046534   ;;  %vm1643_vm12 = vcmask (!%p228_p9), 1047559   ;;  %s2097_s25 = smov (!%p228_p9), [#allocation2]  }
  0x14   : > { %vm1658_vm13 = vcmask (!%p228_p9), 261120  }
  0x15   : > { %s2735_s13 = smov (!%p263_p10, %s1754_s13), 3  ;;  %s2737_s14 = smov (!%p269_p11, %s1756_s14), 31  ;;  %v2214_v22 = vsub.s32 %v362_v19, %v364_v20 }
  0x16   : > { %s1755_s15 = sshll.u32 %s2735_s13, 2  ;;  %s1757_s19 = sshll.u32 %s2737_s14, 2 }
  0x17   : > { %s266_s18 = scalar_lea.vmem %s2721_s0, %s1755_s15  ;;  %s272_s28 = scalar_lea.vmem %s2722_s1, %s1757_s19 }
  0x18   : > { %v2017_v5 = vld [vmem:[%s266_s18] sm:$0xff]   ;;  %v2018_v6 = vld [vmem:[%s272_s28 + $0x10] sm:$0xff]   ;;  %v2019_v7 = vld [vmem:[%s272_s28 + $0x18] sm:$0xff]   ;;  %s2093_s14 = smov 120  }
  0x19   : > { %1868 = vmatmul.mubr.msk.bf16.vlgmr.msra.gmra.mrb[0].mxu0 %vm308_vm2, %v2017_v5  ;;  %1877 = vmatprep.mubr.msk.bf16.mxu1 %vm308_vm2, %v2018_v6  ;;  %v2020_v8 = vld [vmem:[%s272_s28] sm:$0xff]   ;;  %v2021_v10 = vld [vmem:[%s272_s28 + $0x8] sm:$0xff]   ;;  %v2024_v12 = vld [vmem:[%s272_s28 + $0x30] sm:$0xff]  }
  0x1a   : > { %1872 = vmatpush3.bf16.msra.mxu0 %v602_v4  ;;  %1878 = vmatmul.mubr.msk.bf16.vlgmr.msra.gmra.mrb[0].mxu1 %vm308_vm2, %v2019_v7  ;;  %v2022_v9 = vld [vmem:[%s272_s28 + $0x20] sm:$0xff]   ;;  %v2023_v11 = vld [vmem:[%s272_s28 + $0x28] sm:$0xff]   ;;  %v2025_v13 = vld [vmem:[%s272_s28 + $0x38] sm:$0xff]   ;;  %s259_s28 = sand.u32 1, %s2080_s22  }
  0x1b   : > { %1873 = vmatprep.mubr.msk.bf16.mxu0 %vm308_vm2, %v2020_v8  ;;  %1881 = vmatprep.mubr.msk.bf16.mxu1 %vm308_vm2, %v2022_v9  ;;  %s1753_s29 = sshll.u32 %s259_s28, 4  ;;  %s2680_s15 = scalar_lea.sflag [#allocation3], %s259_s28 }
  0x1c   : > { %1965 = vmatprep.subr.msk.bf16.mxu0 %vm767_vm3, %v741_v14  ;;  %s261_s9 = scalar_lea.vmem [#allocation2], %s1753_s29 }
  0x1d   : > { %s1675_s10 = sshll.u32 %s261_s9, 4  ;;  %s2673_s10 = int_to_ptr.vmem [resolvable:$true] %s1675_s10 }
  0x1e   : > { %s2026_s16 = scalar_lea.vmem %s2673_s10, 256 }
  0x1f   : > { %p2027_p12 = scmp.ne.s32.totalorder %s2673_s10, %s2026_s16 }
  0x21   : > { %1874 = vmatmul.mubr.msk.bf16.vlgmr.msra.gmra.mrb[4].mxu0 %vm308_vm2, %v2021_v10  ;;  %p2028_p13 = pnand %p2027_p12, %p2173_p5 }
  0x22   : > { %1882 = vmatmul.mubr.msk.bf16.gmra.mrb[4].mxu1 %vm308_vm2, %v2023_v11  ;;  %1890 = vmatpush3.bf16.msra.mxu0 %v769_v15 }
  0x23   : > { %1885 = vmatprep.mubr.msk.bf16.mxu1 %vm308_vm2, %v2024_v12  ;;  %p2029_p0 = pneg %p2028_p13 }
  0x2a   : > { %1886 = vmatmul.mubr.msk.bf16.gmra.mrb[8].mxu1 %vm308_vm2, %v2025_v13 }
  0xec   : > { %v350_v23 = vpop.f32.mrb[0].mxu0 }
  0xed   : > { %v351_v24 = vadd.f32 %v1758_v21, %v350_v23  ;;  %v1869_v25 = vpop.f32.mrb[1].mxu0  ;;  %v1879_v27 = vpop.f32.mrb[0].mxu1 }
  0xee   : > { %v353_v26 = vpop.f32.mrb[2].mxu0  ;;  %v654_v32 = vpop.f32.mrb[1].mxu1 }
  0xef   : > { %v359_v28 = vcombine.high %v351_v24, %v351_v24  ;;  %v366_v29 = vrot.slane %v351_v24, %v2214_v22  ;;  %v354_v30 = vadd.f32 %v1758_v21, %v353_v26  ;;  %v1870_v31 = vpop.f32.mrb[3].mxu0  ;;  %v1880_v34 = vpop.f32.mrb[2].mxu1 }
  0xf0   : > { %v657_v38 = vpop.f32.mrb[3].mxu1 }
  0xf1   : > { %v373_v35 = vrot.slane %v359_v28, %v2214_v22  ;;  %v374_v36 = vcombine.high %v366_v29, %v366_v29  ;;  %v382_v37 = vrot.slane %v366_v29, %v2214_v22  ;;  %v415_v39 = vrot.slane %v354_v30, %v2214_v22 }
  0xf2   : > { %v408_v47 = vcombine.high %v354_v30, %v354_v30 }
  0xf3   : > { %v375_v40 = vcombine.high %v373_v35, %v373_v35  ;;  %v389_v41 = vrot.slane %v373_v35, %v2214_v22  ;;  %v404_v42 = vcombine.high %v382_v37, %v382_v37  ;;  %v431_v43 = vrot.slane %v415_v39, %v2214_v22 }
  0xf4   : > { %v1875_v44 = vpop.f32.mrb[4].mxu0  ;;  %v460_v45 = vrot.slane %v382_v37, %v2217_v33  ;;  %v396_v46 = vrot.slane %v374_v36, %v2214_v22  ;;  %v422_v8 = vrot.slane %v408_v47, %v2214_v22  ;;  %v423_v9 = vcombine.high %v415_v39, %v415_v39 }
  0xf5   : > { %v405_v48 = vcombine.high %v389_v41, %v389_v41  ;;  %v476_v49 = vrot.slane %v389_v41, %v2217_v33  ;;  %v403_v50 = vrot.slane %v375_v40, %v2214_v22  ;;  %v638_v51 = vpop.f32.mrb[5].mxu0  ;;  %v468_v52 = vrot.slane %v404_v42, %v2217_v33  ;;  %v1883_v55 = vpop.f32.mrb[4].mxu1 }
  0xf6   : > { %v2229_v53 = vadd.f32 %v638_v51, %v460_v45  ;;  %v453_v54 = vcombine.high %v431_v43, %v431_v43  ;;  %v406_v56 = vcombine.high %v396_v46, %v396_v46  ;;  %v1876_v57 = vpop.f32.mrb[6].mxu0  ;;  %v670_v62 = vpop.f32.mrb[5].mxu1  ;;  %v492_v15 = vrot.slane %v431_v43, %v2217_v33 }
  0xf7   : > { %v484_v58 = vrot.slane %v405_v48, %v2217_v33  ;;  %v2232_v59 = vadd.f32 %v654_v32, %v476_v49  ;;  %v407_v60 = vcombine.high %v403_v50, %v403_v50  ;;  %v480_v61 = vrot.slane %v403_v50, %v2217_v33  ;;  %v641_v63 = vpop.f32.mrb[7].mxu0  ;;  %v1884_v3 = vpop.f32.mrb[6].mxu1 }
  0xf8   : > { %v2235_v0 = vadd.f32 %v1875_v44, %v468_v52  ;;  %v500_v1 = vrot.slane %v453_v54, %v2217_v33  ;;  %v472_v2 = vrot.slane %v406_v56, %v2217_v33  ;;  %v673_v7 = vpop.f32.mrb[7].mxu1  ;;  %v701_v13 = vmul.f32 0.05, %v2229_v53 }
  0xf9   : > { %v2239_v4 = vadd.f32 %v1879_v27, %v484_v58  ;;  %v488_v5 = vrot.slane %v407_v60, %v2217_v33  ;;  %v2242_v6 = vadd.f32 %v657_v38, %v480_v61  ;;  %v464_v17 = vrot.slane %v396_v46, %v2217_v33 }
  0xfa   : > { %v2245_v10 = vadd.f32 %v1883_v55, %v500_v1  ;;  %v2247_v11 = vadd.f32 %v1876_v57, %v472_v2  ;;  %v424_v18 = vcombine.high %v422_v8, %v422_v8  ;;  %v703_v19 = vmul.f32 0.05, %v2235_v0 }
  0xfb   : > { %v2249_v12 = vadd.f32 %v1880_v34, %v488_v5  ;;  %v706_v16 = vmul.f32 0.05, %v2242_v6  ;;  %v2257_v20 = vadd.f32 %v670_v62, %v492_v15  ;;  %v445_v21 = vrot.slane %v423_v9, %v2214_v22 }
  0xfc   : > { %v704_v14 = vmul.f32 0.05, %v2247_v11  ;;  %v705_v24 = vmul.f32 0.05, %v2232_v59  ;;  %v2261_v25 = vadd.f32 %v641_v63, %v464_v17  ;;  %v438_v26 = vrot.slane %v422_v8, %v2214_v22 }
  0xfd   : > { %v1887_v23 = vpop.f32.mrb[8].mxu1  ;;  %v717_v28 = vmax.f32 %v2229_v53, %v701_v13  ;;  %v455_v30 = vcombine.high %v445_v21, %v445_v21  ;;  %v496_v31 = vrot.slane %v445_v21, %v2217_v33  ;;  %v722_v34 = vmax.f32 %v2242_v6, %v706_v16 }
  0xfe   : > { %v686_v27 = vpop.f32.mrb[9].mxu1  ;;  %v720_v29 = vmax.f32 %v2247_v11, %v704_v14  ;;  %v702_v35 = vmul.f32 0.05, %v2261_v25  ;;  %v454_v36 = vcombine.high %v438_v26, %v438_v26  ;;  %v508_v37 = vrot.slane %v438_v26, %v2217_v33 }
  0xff   : > { %v1888_v32 = vpop.f32.mrb[10].mxu1  ;;  %v719_v39 = vmax.f32 %v2235_v0, %v703_v19  ;;  %v504_v40 = vrot.slane %v455_v30, %v2217_v33  ;;  %v2272_v41 = vadd.f32 %v673_v7, %v496_v31  ;;  %v452_v42 = vrot.slane %v424_v18, %v2214_v22 }
 0x100   : > { %v689_v38 = vpop.f32.mrb[11].mxu1  ;;  %v721_v43 = vmax.f32 %v2232_v59, %v705_v24  ;;  %v718_v44 = vmax.f32 %v2261_v25, %v702_v35  ;;  %v516_v45 = vrot.slane %v454_v36, %v2217_v33  ;;  %v2278_v46 = vadd.f32 %v686_v27, %v508_v37  ;;  %v1785_v27 = vld [vmem:[%s2726_s5 + $0x4] sm:$0xf] }
 0x101   : > { %v734_v47 = vpack.c.bf16 %v720_v29, %v719_v39  ;;  %v2280_v48 = vadd.f32 %v1884_v3, %v504_v40  ;;  %v456_v49 = vcombine.high %v452_v42, %v452_v42  ;;  %v512_v50 = vrot.slane %v452_v42, %v2217_v33  ;;  %1966 = vmatprep.subr.msk.bf16.mxu1 %vm767_vm3, %v1785_v27 }
 0x102   : > { %v735_v51 = vpack.c.bf16 %v722_v34, %v721_v43  ;;  %v733_v52 = vpack.c.bf16 %v718_v44, %v717_v28  ;;  %v2283_v54 = vadd.f32 %v1887_v23, %v516_v45  ;;  %v708_v22 = vmul.f32 0.05, %v2249_v12 }
 0x103   : > { %v520_v55 = vrot.slane %v456_v49, %v2217_v33  ;;  %v2287_v56 = vadd.f32 %v689_v38, %v512_v50  ;;  %v710_v57 = vmul.f32 0.05, %v2272_v41  ;;  %v707_v58 = vmul.f32 0.05, %v2239_v4 }
 0x104   : > { %1891 = vmatprep.mubr.msk.bf16.mxu0 %vm742_vm4, %v733_v52  ;;  %v709_v61 = vmul.f32 0.05, %v2257_v20  ;;  %v724_v62 = vmax.f32 %v2249_v12, %v708_v22  ;;  %v712_v3 = vmul.f32 0.05, %v2280_v48  ;;  %v711_v8 = vmul.f32 0.05, %v2245_v10 }
 0x105   : > { %v2292_v60 = vadd.f32 %v1888_v32, %v520_v55  ;;  %1892 = vmatmul.mubr.msk.bf16.vlgmr.msra.gmra.mrb[8].mxu0 %vm742_vm4, %v734_v47  ;;  %v726_v33 = vmax.f32 %v2272_v41, %v710_v57  ;;  %v723_v63 = vmax.f32 %v2239_v4, %v707_v58  ;;  %v714_v7 = vmul.f32 0.05, %v2287_v56 }
 0x106   : > { %1895 = vmatprep.mubr.msk.bf16.mxu0 %vm742_vm4, %v735_v51  ;;  %v725_v1 = vmax.f32 %v2257_v20, %v709_v61  ;;  %v713_v9 = vmul.f32 0.05, %v2278_v46  ;;  %v728_v13 = vmax.f32 %v2280_v48, %v712_v3  ;;  %v727_v15 = vmax.f32 %v2245_v10, %v711_v8 }
 0x107   : > { %v736_v2 = vpack.c.bf16 %v724_v62, %v723_v63  ;;  %v730_v14 = vmax.f32 %v2287_v56, %v714_v7  ;;  %v716_v18 = vmul.f32 0.05, %v2292_v60  ;;  %v715_v21 = vmul.f32 0.05, %v2283_v54 }
 0x108   : > { %v737_v5 = vpack.c.bf16 %v726_v33, %v725_v1  ;;  %v729_v16 = vmax.f32 %v2278_v46, %v713_v9  ;;  %v738_v17 = vpack.c.bf16 %v728_v13, %v727_v15  ;;  %v975_v28 = vsel %vm767_vm3, %v1785_v27, 0 }
 0x109   : > { %v732_v23 = vmax.f32 %v2292_v60, %v716_v18  ;;  %v731_v24 = vmax.f32 %v2283_v54, %v715_v21  ;;  %1908 = vmatpush3.bf16.msra.mxu1 %v975_v28 }
 0x10a   : > { %v739_v19 = vpack.c.bf16 %v730_v14, %v729_v16 }
 0x10b   : > { %v740_v26 = vpack.c.bf16 %v732_v23, %v731_v24 }
 0x10d   : > { %1896 = vmatmul.mubr.msk.bf16.gmra.mrb[12].mxu0 %vm742_vm4, %v736_v2 }
 0x10e   : > { %1899 = vmatprep.mubr.msk.bf16.mxu0 %vm742_vm4, %v737_v5 }
 0x115   : > { %1900 = vmatmul.mubr.msk.bf16.gmra.mrb[16].mxu0 %vm742_vm4, %v738_v17 }
 0x116   : > { %1903 = vmatprep.mubr.msk.bf16.mxu0 %vm742_vm4, %v739_v19 }
 0x11d   : > { %1904 = vmatmul.mubr.msk.bf16.gmra.mrb[20].mxu0 %vm742_vm4, %v740_v26 }
 0x1d8   : > { %v1893_v29 = vpop.f32.mrb[8].mxu0 }
 0x1d9   : > { %v805_v30 = vpop.f32.mrb[9].mxu0  ;;  %v2330_v36 = vadd.f32 %v1893_v29, %v2235_v0 }
 0x1da   : > { %v2324_v31 = vadd.f32 %v805_v30, %v2229_v53  ;;  %v1894_v32 = vpop.f32.mrb[10].mxu0 }
 0x1db   : > { %v2327_v34 = vadd.f32 %v1894_v32, %v2247_v11  ;;  %v808_v35 = vpop.f32.mrb[11].mxu0  ;;  %v886_v53 = vmul.f32 0.05, %v2330_v36 }
 0x1dc   : > { %v884_v37 = vmul.f32 0.05, %v2324_v31  ;;  %v2334_v38 = vadd.f32 %v808_v35, %v2261_v25 }
 0x1dd   : > { %v887_v39 = vmul.f32 0.05, %v2327_v34  ;;  %v902_v51 = vmax.f32 %v2330_v36, %v886_v53 }
 0x1de   : > { %v885_v40 = vmul.f32 0.05, %v2334_v38  ;;  %v900_v43 = vmax.f32 %v2324_v31, %v884_v37 }
 0x1df   : > { %v903_v0 = vmax.f32 %v2327_v34, %v887_v39 }
 0x1e0   : > { %v1897_v42 = vpop.f32.mrb[12].mxu0  ;;  %v901_v11 = vmax.f32 %v2334_v38, %v885_v40 }
 0x1e1   : > { %v821_v44 = vpop.f32.mrb[13].mxu0  ;;  %v2350_v52 = vadd.f32 %v1897_v42, %v2239_v4 }
 0x1e2   : > { %v2343_v45 = vadd.f32 %v821_v44, %v2232_v59  ;;  %v1898_v47 = vpop.f32.mrb[14].mxu0  ;;  %v916_v25 = vpack.c.bf16 %v901_v11, %v900_v43 }
 0x1e3   : > { %v2346_v49 = vadd.f32 %v1898_v47, %v2249_v12  ;;  %v824_v50 = vpop.f32.mrb[15].mxu0  ;;  %v917_v12 = vpack.c.bf16 %v903_v0, %v902_v51  ;;  %v890_v58 = vmul.f32 0.05, %v2350_v52  ;;  %v1794_v51 = vld [vmem:[%s2726_s5 + $0x8] sm:$0xf] }
 0x1e4   : > { %v888_v22 = vmul.f32 0.05, %v2343_v45  ;;  %v2354_v55 = vadd.f32 %v824_v50, %v2242_v6  ;;  %934 = vrot.lane.b32.xlu0 %v916_v25, %s2093_s14  ;;  %1967 = vmatprep.subr.msk.bf16.mxu0 %vm767_vm3, %v1794_v51 }
 0x1e5   : > { %v891_v59 = vmul.f32 0.05, %v2346_v49  ;;  %v906_v9 = vmax.f32 %v2350_v52, %v890_v58 }
 0x1e6   : > { %v889_v57 = vmul.f32 0.05, %v2354_v55  ;;  %v904_v4 = vmax.f32 %v2343_v45, %v888_v22  ;;  %v1181_v22 = vsel %vm767_vm3, %v1794_v51, 0 }
 0x1e7   : > { %v907_v63 = vmax.f32 %v2346_v49, %v891_v59  ;;  %1926 = vmatpush3.bf16.msra.mxu0 %v1181_v22 }
 0x1e8   : > { %936 = vrot.lane.b32.xlu0 %v917_v12, %s2093_s14  ;;  %v1901_v61 = vpop.f32.mrb[16].mxu0  ;;  %v905_v62 = vmax.f32 %v2354_v55, %v889_v57 }
 0x1e9   : > { %v2364_v6 = vadd.f32 %v1901_v61, %v2245_v10  ;;  %v837_v33 = vpop.f32.mrb[17].mxu0  ;;  %v919_v15 = vpack.c.bf16 %v907_v63, %v906_v9 }
 0x1ea   : > { %v2368_v1 = vadd.f32 %v837_v33, %v2257_v20  ;;  %v1902_v2 = vpop.f32.mrb[18].mxu0  ;;  %v918_v3 = vpack.c.bf16 %v905_v62, %v904_v4 }
 0x1eb   : > { %v894_v5 = vmul.f32 0.05, %v2364_v6  ;;  %v2372_v7 = vadd.f32 %v1902_v2, %v2280_v48  ;;  %v840_v8 = vpop.f32.mrb[19].mxu0 }
 0x1ec   : > { %v892_v13 = vmul.f32 0.05, %v2368_v1  ;;  %v2377_v10 = vadd.f32 %v840_v8, %v2272_v41  ;;  %938 = vrot.lane.b32.xlu1 %v918_v3, %s2093_s14 }
 0x1ed   : > { %v895_v20 = vmul.f32 0.05, %v2372_v7  ;;  %v910_v16 = vmax.f32 %v2364_v6, %v894_v5 }
 0x1ee   : > { %v893_v14 = vmul.f32 0.05, %v2377_v10  ;;  %v908_v17 = vmax.f32 %v2368_v1, %v892_v13 }
 0x1ef   : > { %v911_v48 = vmax.f32 %v2372_v7, %v895_v20 }
 0x1f0   : > { %v909_v18 = vmax.f32 %v2377_v10, %v893_v14  ;;  %940 = vrot.lane.b32.xlu1 %v919_v15, %s2093_s14  ;;  %v1905_v19 = vpop.f32.mrb[20].mxu0 }
 0x1f1   : > { %v2388_v41 = vadd.f32 %v1905_v19, %v2283_v54  ;;  %v853_v21 = vpop.f32.mrb[21].mxu0  ;;  %v921_v23 = vpack.c.bf16 %v911_v48, %v910_v16 }
 0x1f2   : > { %v2391_v24 = vadd.f32 %v853_v21, %v2278_v46  ;;  %v1906_v26 = vpop.f32.mrb[22].mxu0  ;;  %v920_v27 = vpack.c.bf16 %v909_v18, %v908_v17 }
 0x1f3   : > { %v898_v28 = vmul.f32 0.05, %v2388_v41  ;;  %v2395_v29 = vadd.f32 %v1906_v26, %v2292_v60  ;;  %v856_v30 = vpop.f32.mrb[23].mxu0 }
 0x1f4   : > { %v896_v32 = vmul.f32 0.05, %v2391_v24  ;;  %v2399_v35 = vadd.f32 %v856_v30, %v2287_v56  ;;  %944 = vrot.lane.b32.xlu1 %v921_v23, %s2093_s14  ;;  %942 = vrot.lane.b32.xlu0 %v920_v27, %s2093_s14 }
 0x1f5   : > { %v899_v46 = vmul.f32 0.05, %v2395_v29  ;;  %v914_v37 = vmax.f32 %v2388_v41, %v898_v28 }
 0x1f6   : > { %v897_v54 = vmul.f32 0.05, %v2399_v35  ;;  %v912_v60 = vmax.f32 %v2391_v24, %v896_v32 }
 0x1f7   : > { %v915_v39 = vmax.f32 %v2395_v29, %v899_v46 }
 0x1f8   : > { %v913_v40 = vmax.f32 %v2399_v35, %v897_v54 }
 0x1f9   : > { %v923_v53 = vpack.c.bf16 %v915_v39, %v914_v37 }
 0x1fa   : > { %v922_v42 = vpack.c.bf16 %v913_v40, %v912_v60 }
 0x1fb   : > { %948 = vrot.lane.b32.xlu1 %v923_v53, %s2093_s14 }
 0x1fc   : > { %946 = vrot.lane.b32.xlu0 %v922_v42, %s2093_s14  ;;  %s2678_s14 = scalar_lea.hbm %s2727_s6, %s1817_s11 }
 0x256   : > { %v935_v56 = vpop.permute.xlu0 %934 }
 0x257   : > { %1909 = vmatprep.mubr.msk.bf16.mxu1 %vm742_vm4, %v935_v56 }
 0x25a   : > { %v937_v43 = vpop.permute.xlu0 %936 }
 0x25b   : > { %1910 = vmatmul.mubr.msk.bf16.vlgmr.msra.gmra.mrb[12].mxu1 %vm742_vm4, %v937_v43 }
 0x25e   : > { %v939_v11 = vpop.permute.xlu1 %938 }
 0x25f   : > { %1913 = vmatprep.mubr.msk.bf16.mxu1 %vm742_vm4, %v939_v11 }
 0x262   : > { %v941_v44 = vpop.permute.xlu1 %940 }
 0x263   : > { %1914 = vmatmul.mubr.msk.bf16.gmra.mrb[16].mxu1 %vm742_vm4, %v941_v44 }
 0x266   : > { %v943_v0 = vpop.permute.xlu0 %942  ;;  %v945_v47 = vpop.permute.xlu1 %944 }
 0x267   : > { %1917 = vmatprep.mubr.msk.bf16.mxu1 %vm742_vm4, %v943_v0 }
 0x26b   : > { %1918 = vmatmul.mubr.msk.bf16.gmra.mrb[20].mxu1 %vm742_vm4, %v945_v47 }
 0x26d   : > { %v949_v50 = vpop.permute.xlu1 %948 }
 0x26e   : > { %v947_v25 = vpop.permute.xlu0 %946 }
 0x26f   : > { %1921 = vmatprep.mubr.msk.bf16.mxu1 %vm742_vm4, %v947_v25 }
 0x273   : > { %1922 = vmatmul.mubr.msk.bf16.gmra.mrb[24].mxu1 %vm742_vm4, %v949_v50 }
 0x32e   : > { %v1911_v59 = vpop.f32.mrb[12].mxu1 }
 0x32f   : > { %v2425_v57 = vadd.f32 %v1911_v59, %v2330_v36  ;;  %v1011_v12 = vpop.f32.mrb[13].mxu1 }
 0x330   : > { %v2428_v58 = vadd.f32 %v1011_v12, %v2324_v31  ;;  %v1912_v61 = vpop.f32.mrb[14].mxu1 }
 0x331   : > { %v1092_v4 = vmul.f32 0.05, %v2425_v57  ;;  %v2432_v62 = vadd.f32 %v1912_v61, %v2327_v34  ;;  %v1014_v33 = vpop.f32.mrb[15].mxu1 }
 0x332   : > { %v1090_v63 = vmul.f32 0.05, %v2428_v58  ;;  %v2436_v2 = vadd.f32 %v1014_v33, %v2334_v38 }
 0x333   : > { %v1093_v3 = vmul.f32 0.05, %v2432_v62  ;;  %v1108_v5 = vmax.f32 %v2425_v57, %v1092_v4 }
 0x334   : > { %v1091_v36 = vmul.f32 0.05, %v2436_v2  ;;  %v1106_v8 = vmax.f32 %v2428_v58, %v1090_v63 }
 0x335   : > { %v1109_v31 = vmax.f32 %v2432_v62, %v1093_v3 }
 0x336   : > { %v1107_v9 = vmax.f32 %v2436_v2, %v1091_v36  ;;  %v1915_v34 = vpop.f32.mrb[16].mxu1 }
 0x337   : > { %v2445_v13 = vadd.f32 %v1915_v34, %v2350_v52  ;;  %v1027_v20 = vpop.f32.mrb[17].mxu1  ;;  %v1123_v14 = vpack.c.bf16 %v1109_v31, %v1108_v5 }
 0x338   : > { %v2448_v38 = vadd.f32 %v1027_v20, %v2343_v45  ;;  %v1916_v15 = vpop.f32.mrb[18].mxu1  ;;  %v1122_v16 = vpack.c.bf16 %v1107_v9, %v1106_v8 }
 0x339   : > { %v1096_v48 = vmul.f32 0.05, %v2445_v13  ;;  %v2452_v17 = vadd.f32 %v1916_v15, %v2346_v49  ;;  %v1030_v18 = vpop.f32.mrb[19].mxu1  ;;  %1142 = vrot.lane.b32.xlu1 %v1123_v14, %s2094_s17 }
 0x33a   : > { %v1094_v19 = vmul.f32 0.05, %v2448_v38  ;;  %v2457_v52 = vadd.f32 %v1030_v18, %v2354_v55  ;;  %1140 = vrot.lane.b32.xlu0 %v1122_v16, %s2094_s17  ;;  %v1803_v16 = vld [vmem:[%s2726_s5 + $0xc] sm:$0xf] }
 0x33b   : > { %v1097_v45 = vmul.f32 0.05, %v2452_v17  ;;  %v1112_v23 = vmax.f32 %v2445_v13, %v1096_v48  ;;  %1968 = vmatprep.subr.msk.bf16.mxu1 %vm767_vm3, %v1803_v16  ;;  %v1387_v48 = vsel %vm767_vm3, %v1803_v16, 0 }
 0x33c   : > { %v1095_v21 = vmul.f32 0.05, %v2457_v52  ;;  %v1110_v26 = vmax.f32 %v2448_v38, %v1094_v19  ;;  %1944 = vmatpush3.bf16.msra.mxu1 %v1387_v48 }
 0x33d   : > { %v1113_v49 = vmax.f32 %v2452_v17, %v1097_v45 }
 0x33e   : > { %v1111_v27 = vmax.f32 %v2457_v52, %v1095_v21  ;;  %v1919_v28 = vpop.f32.mrb[20].mxu1 }
 0x33f   : > { %v2467_v30 = vadd.f32 %v1919_v28, %v2364_v6  ;;  %v1043_v55 = vpop.f32.mrb[21].mxu1  ;;  %v1125_v32 = vpack.c.bf16 %v1113_v49, %v1112_v23 }
 0x340   : > { %v2470_v46 = vadd.f32 %v1043_v55, %v2368_v1  ;;  %v1920_v54 = vpop.f32.mrb[22].mxu1  ;;  %v1124_v37 = vpack.c.bf16 %v1111_v27, %v1110_v26 }
 0x341   : > { %v1100_v39 = vmul.f32 0.05, %v2467_v30  ;;  %v2474_v60 = vadd.f32 %v1920_v54, %v2372_v7  ;;  %v1046_v40 = vpop.f32.mrb[23].mxu1  ;;  %1146 = vrot.lane.b32.xlu1 %v1125_v32, %s2094_s17 }
 0x342   : > { %v1098_v53 = vmul.f32 0.05, %v2470_v46  ;;  %v2479_v6 = vadd.f32 %v1046_v40, %v2377_v10  ;;  %1144 = vrot.lane.b32.xlu0 %v1124_v37, %s2094_s17 }
 0x343   : > { %v1101_v1 = vmul.f32 0.05, %v2474_v60  ;;  %v1116_v56 = vmax.f32 %v2467_v30, %v1100_v39 }
 0x344   : > { %v1099_v42 = vmul.f32 0.05, %v2479_v6  ;;  %v1114_v7 = vmax.f32 %v2470_v46, %v1098_v53 }
 0x345   : > { %v1117_v43 = vmax.f32 %v2474_v60, %v1101_v1 }
 0x346   : > { %v1115_v11 = vmax.f32 %v2479_v6, %v1099_v42  ;;  %v1923_v44 = vpop.f32.mrb[24].mxu1 }
 0x347   : > { %v2489_v0 = vadd.f32 %v1923_v44, %v2388_v41  ;;  %v1059_v10 = vpop.f32.mrb[25].mxu1  ;;  %v1127_v47 = vpack.c.bf16 %v1117_v43, %v1116_v56 }
 0x348   : > { %v2492_v25 = vadd.f32 %v1059_v10, %v2391_v24  ;;  %v1924_v50 = vpop.f32.mrb[26].mxu1  ;;  %v1126_v51 = vpack.c.bf16 %v1115_v11, %v1114_v7 }
 0x349   : > { %v1104_v22 = vmul.f32 0.05, %v2489_v0  ;;  %v2496_v59 = vadd.f32 %v1924_v50, %v2395_v29  ;;  %1150 = vrot.lane.b32.xlu1 %v1127_v47, %s2094_s17  ;;  %v1062_v12 = vpop.f32.mrb[27].mxu1 }
 0x34a   : > { %v1102_v61 = vmul.f32 0.05, %v2492_v25  ;;  %v2501_v41 = vadd.f32 %v1062_v12, %v2399_v35  ;;  %1148 = vrot.lane.b32.xlu0 %v1126_v51, %s2094_s17 }
 0x34b   : > { %v1105_v24 = vmul.f32 0.05, %v2496_v59  ;;  %v1120_v33 = vmax.f32 %v2489_v0, %v1104_v22 }
 0x34c   : > { %v1103_v4 = vmul.f32 0.05, %v2501_v41  ;;  %v1118_v29 = vmax.f32 %v2492_v25, %v1102_v61 }
 0x34d   : > { %v1121_v63 = vmax.f32 %v2496_v59, %v1105_v24 }
 0x34e   : > { %v1119_v3 = vmax.f32 %v2501_v41, %v1103_v4 }
 0x34f   : > { %v1129_v36 = vpack.c.bf16 %v1121_v63, %v1120_v33 }
 0x350   : > { %v1128_v5 = vpack.c.bf16 %v1119_v3, %v1118_v29 }
 0x351   : > { %1154 = vrot.lane.b32.xlu1 %v1129_v36, %s2094_s17 }
 0x352   : > { %1152 = vrot.lane.b32.xlu0 %v1128_v5, %s2094_s17  ;;  %s2030_s17 = sshll.u32 %s2097_s25, 4  ;;  %s2031_s17 = int_to_ptr.vmem [resolvable:$false] %s2030_s17 }
 0x353   : > { %s2032_s18 = scalar_lea.vmem %s2031_s17, 512  ;;  %p2033_p1 = scmp.lt.s32.totalorder %s2673_s10, %s2031_s17 }
 0x354   : > { %p2034_p2 = scmp.lt.s32.totalorder %s2032_s18, %s2026_s16 }
 0x356   : > { %p2035_p3 = por %p2034_p2, %p2033_p1 }
 0x358   : > { %p2036_p4 = pnand %p2035_p3, %p2029_p0 }
 0x3ab   : > { %v1143_v31 = vpop.permute.xlu1 %1142 }
 0x3ac   : > { %v1141_v35 = vpop.permute.xlu0 %1140 }
 0x3ad   : > { %1927 = vmatprep.mubr.msk.bf16.mxu0 %vm742_vm4, %v1141_v35 }
 0x3ae   : > { %1928 = vmatmul.mubr.msk.bf16.vlgmr.msra.gmra.mrb[24].mxu0 %vm742_vm4, %v1143_v31 }
 0x3b3   : > { %v1147_v9 = vpop.permute.xlu1 %1146 }
 0x3b4   : > { %v1145_v8 = vpop.permute.xlu0 %1144 }
 0x3b5   : > { %1931 = vmatprep.mubr.msk.bf16.mxu0 %vm742_vm4, %v1145_v8 }
 0x3b6   : > { %1932 = vmatmul.mubr.msk.bf16.gmra.mrb[28].mxu0 %vm742_vm4, %v1147_v9 }
 0x3bb   : > { %v1151_v20 = vpop.permute.xlu1 %1150 }
 0x3bc   : > { %v1149_v34 = vpop.permute.xlu0 %1148 }
 0x3bd   : > { %1935 = vmatprep.mubr.msk.bf16.mxu0 %vm742_vm4, %v1149_v34 }
 0x3be   : > { %1936 = vmatmul.mubr.msk.bf16.gmra.mrb[32].mxu0 %vm742_vm4, %v1151_v20 }
 0x3c3   : > { %v1155_v15 = vpop.permute.xlu1 %1154 }
 0x3c4   : > { %v1153_v14 = vpop.permute.xlu0 %1152 }
 0x3c5   : > { %1939 = vmatprep.mubr.msk.bf16.mxu0 %vm742_vm4, %v1153_v14 }
 0x3c6   : > { %1940 = vmatmul.mubr.msk.bf16.gmra.mrb[36].mxu0 %vm742_vm4, %v1155_v15 }
 0x481   : > { %v1929_v18 = vpop.f32.mrb[24].mxu0 }
 0x482   : > { %v2526_v19 = vadd.f32 %v1929_v18, %v2425_v57  ;;  %v1217_v45 = vpop.f32.mrb[25].mxu0 }
 0x483   : > { %v2529_v21 = vadd.f32 %v1217_v45, %v2428_v58  ;;  %v1930_v23 = vpop.f32.mrb[26].mxu0 }
 0x484   : > { %v1298_v49 = vmul.f32 0.05, %v2526_v19  ;;  %v2533_v26 = vadd.f32 %v1930_v23, %v2432_v62  ;;  %v1220_v27 = vpop.f32.mrb[27].mxu0 }
 0x485   : > { %v1296_v28 = vmul.f32 0.05, %v2529_v21  ;;  %v2537_v55 = vadd.f32 %v1220_v27, %v2436_v2 }
 0x486   : > { %v1299_v32 = vmul.f32 0.05, %v2533_v26  ;;  %v1314_v54 = vmax.f32 %v2526_v19, %v1298_v49 }
 0x487   : > { %v1297_v57 = vmul.f32 0.05, %v2537_v55  ;;  %v1312_v37 = vmax.f32 %v2529_v21, %v1296_v28 }
 0x488   : > { %v1315_v58 = vmax.f32 %v2533_v26, %v1299_v32 }
 0x489   : > { %v1313_v39 = vmax.f32 %v2537_v55, %v1297_v57  ;;  %v1933_v62 = vpop.f32.mrb[28].mxu0 }
 0x48a   : > { %v2546_v40 = vadd.f32 %v1933_v62, %v2445_v13  ;;  %v1233_v53 = vpop.f32.mrb[29].mxu0  ;;  %v1329_v1 = vpack.c.bf16 %v1315_v58, %v1314_v54 }
 0x48b   : > { %v2549_v2 = vadd.f32 %v1233_v53, %v2448_v38  ;;  %v1934_v42 = vpop.f32.mrb[30].mxu0  ;;  %v1328_v56 = vpack.c.bf16 %v1313_v39, %v1312_v37 }
 0x48c   : > { %v1302_v43 = vmul.f32 0.05, %v2546_v40  ;;  %v2553_v7 = vadd.f32 %v1934_v42, %v2452_v17  ;;  %1348 = vrot.lane.b32.xlu1 %v1329_v1, %s2095_s20  ;;  %v1236_v11 = vpop.f32.mrb[31].mxu0 }
 0x48d   : > { %v1300_v44 = vmul.f32 0.05, %v2549_v2  ;;  %v2558_v13 = vadd.f32 %v1236_v11, %v2457_v52  ;;  %1346 = vrot.lane.b32.xlu0 %v1328_v56, %s2095_s20 }
 0x48e   : > { %v1303_v38 = vmul.f32 0.05, %v2553_v7  ;;  %v1318_v47 = vmax.f32 %v2546_v40, %v1302_v43 }
 0x48f   : > { %v1301_v10 = vmul.f32 0.05, %v2558_v13  ;;  %v1316_v50 = vmax.f32 %v2549_v2, %v1300_v44 }
 0x490   : > { %v1319_v17 = vmax.f32 %v2553_v7, %v1303_v38 }
 0x491   : > { %v1317_v51 = vmax.f32 %v2558_v13, %v1301_v10  ;;  %v1937_v22 = vpop.f32.mrb[32].mxu0 }
 0x492   : > { %v2568_v12 = vadd.f32 %v1937_v22, %v2467_v30  ;;  %v1249_v52 = vpop.f32.mrb[33].mxu0  ;;  %v1331_v61 = vpack.c.bf16 %v1319_v17, %v1318_v47 }
 0x493   : > { %v2571_v24 = vadd.f32 %v1249_v52, %v2470_v46  ;;  %v1938_v4 = vpop.f32.mrb[34].mxu0  ;;  %v1330_v33 = vpack.c.bf16 %v1317_v51, %v1316_v50 }
 0x494   : > { %v1306_v63 = vmul.f32 0.05, %v2568_v12  ;;  %v2575_v29 = vadd.f32 %v1938_v4, %v2474_v60  ;;  %1352 = vrot.lane.b32.xlu1 %v1331_v61, %s2095_s20  ;;  %v1252_v3 = vpop.f32.mrb[35].mxu0 }
 0x495   : > { %v1304_v36 = vmul.f32 0.05, %v2571_v24  ;;  %v2580_v30 = vadd.f32 %v1252_v3, %v2479_v6  ;;  %1350 = vrot.lane.b32.xlu0 %v1330_v33, %s2095_s20 }
 0x496   : > { %v1307_v46 = vmul.f32 0.05, %v2575_v29  ;;  %v1322_v35 = vmax.f32 %v2568_v12, %v1306_v63 }
 0x497   : > { %v1305_v5 = vmul.f32 0.05, %v2580_v30  ;;  %v1320_v60 = vmax.f32 %v2571_v24, %v1304_v36 }
 0x498   : > { %v1323_v31 = vmax.f32 %v2575_v29, %v1307_v46 }
 0x499   : > { %v1321_v8 = vmax.f32 %v2580_v30, %v1305_v5  ;;  %v1941_v9 = vpop.f32.mrb[36].mxu0 }
 0x49a   : > { %v2590_v34 = vadd.f32 %v1941_v9, %v2489_v0  ;;  %v1265_v6 = vpop.f32.mrb[37].mxu0  ;;  %v1333_v20 = vpack.c.bf16 %v1323_v31, %v1322_v35 }
 0x49b   : > { %v2593_v14 = vadd.f32 %v1265_v6, %v2492_v25  ;;  %v1942_v15 = vpop.f32.mrb[38].mxu0  ;;  %v1332_v16 = vpack.c.bf16 %v1321_v8, %v1320_v60 }
 0x49c   : > { %v1310_v48 = vmul.f32 0.05, %v2590_v34  ;;  %v2597_v18 = vadd.f32 %v1942_v15, %v2496_v59  ;;  %1356 = vrot.lane.b32.xlu1 %v1333_v20, %s2095_s20  ;;  %v1268_v45 = vpop.f32.mrb[39].mxu0 }
 0x49d   : > { %v1308_v23 = vmul.f32 0.05, %v2593_v14  ;;  %v2602_v0 = vadd.f32 %v1268_v45, %v2501_v41  ;;  %1354 = vrot.lane.b32.xlu0 %v1332_v16, %s2095_s20 }
 0x49e   : > { %v1311_v25 = vmul.f32 0.05, %v2597_v18  ;;  %v1326_v27 = vmax.f32 %v2590_v34, %v1310_v48 }
 0x49f   : > { %v1309_v49 = vmul.f32 0.05, %v2602_v0  ;;  %v1324_v59 = vmax.f32 %v2593_v14, %v1308_v23 }
 0x4a0   : > { %v1327_v28 = vmax.f32 %v2597_v18, %v1311_v25 }
 0x4a1   : > { %v1325_v32 = vmax.f32 %v2602_v0, %v1309_v49 }
 0x4a2   : > { %v1335_v57 = vpack.c.bf16 %v1327_v28, %v1326_v27 }
 0x4a3   : > { %v1334_v54 = vpack.c.bf16 %v1325_v32, %v1324_v59 }
 0x4a4   : > { %1360 = vrot.lane.b32.xlu1 %v1335_v57, %s2095_s20 }
 0x4a5   : > { %1358 = vrot.lane.b32.xlu0 %v1334_v54, %s2095_s20 }
 0x4fe   : > { %v1349_v58 = vpop.permute.xlu1 %1348 }
 0x4ff   : > { %v1347_v41 = vpop.permute.xlu0 %1346 }
 0x500   : > { %1945 = vmatprep.mubr.msk.bf16.mxu1 %vm742_vm4, %v1347_v41 }
 0x501   : > { %1946 = vmatmul.mubr.msk.bf16.vlgmr.msra.gmra.mrb[28].mxu1 %vm742_vm4, %v1349_v58 }
 0x506   : > { %v1353_v39 = vpop.permute.xlu1 %1352 }
 0x507   : > { %v1351_v37 = vpop.permute.xlu0 %1350 }
 0x508   : > { %1949 = vmatprep.mubr.msk.bf16.mxu1 %vm742_vm4, %v1351_v37 }
 0x509   : > { %1950 = vmatmul.mubr.msk.bf16.gmra.mrb[32].mxu1 %vm742_vm4, %v1353_v39 }
 0x50e   : > { %v1357_v53 = vpop.permute.xlu1 %1356 }
 0x50f   : > { %v1355_v62 = vpop.permute.xlu0 %1354 }
 0x510   : > { %1953 = vmatprep.mubr.msk.bf16.mxu1 %vm742_vm4, %v1355_v62 }
 0x511   : > { %1954 = vmatmul.mubr.msk.bf16.gmra.mrb[36].mxu1 %vm742_vm4, %v1357_v53 }
 0x516   : > { %v1361_v42 = vpop.permute.xlu1 %1360 }
 0x517   : > { %v1359_v1 = vpop.permute.xlu0 %1358 }
 0x518   : > { %1957 = vmatprep.mubr.msk.bf16.mxu1 %vm742_vm4, %v1359_v1 }
 0x519   : > { %1958 = vmatmul.mubr.msk.bf16.gmra.mrb[40].mxu1 %vm742_vm4, %v1361_v42 }
 0x5d4   : > { %v1947_v56 = vpop.f32.mrb[28].mxu1 }
 0x5d5   : > { %v1488_v43 = vadd.f32 %v1947_v56, %v2526_v19  ;;  %v1423_v11 = vpop.f32.mrb[29].mxu1 }
 0x5d6   : > { %v1486_v44 = vadd.f32 %v1423_v11, %v2529_v21  ;;  %v1948_v38 = vpop.f32.mrb[30].mxu1 }
 0x5d7   : > { %v1517_v10 = vsel %vm1502_vm5, %v1488_v43, -inf  ;;  %v1489_v47 = vadd.f32 %v1948_v38, %v2533_v26  ;;  %v1426_v17 = vpop.f32.mrb[31].mxu1 }
 0x5d8   : > { %v1518_v50 = vrot.slane %v1517_v10, 4  ;;  %v1503_v51 = vsel %vm1502_vm5, %v1486_v44, -inf  ;;  %v1487_v22 = vadd.f32 %v1426_v17, %v2537_v55 }
 0x5d9   : > { %v1504_v52 = vrot.slane %v1503_v51, 4  ;;  %v1524_v61 = vsel %vm1502_vm5, %v1489_v47, -inf }
 0x5da   : > { %v1519_v4 = vmax.f32 %v1517_v10, %v1518_v50  ;;  %v1525_v33 = vrot.slane %v1524_v61, 4  ;;  %v1510_v19 = vsel %vm1502_vm5, %v1487_v22, -inf }
 0x5db   : > { %v1505_v63 = vmax.f32 %v1503_v51, %v1504_v52  ;;  %v1511_v21 = vrot.slane %v1510_v19, 4 }
 0x5dc   : > { %v1520_v3 = vrot.slane %v1519_v4, 2  ;;  %v1526_v36 = vmax.f32 %v1524_v61, %v1525_v33  ;;  %v1951_v46 = vpop.f32.mrb[32].mxu1 }
 0x5dd   : > { %v1506_v5 = vrot.slane %v1505_v63, 2  ;;  %v1512_v26 = vmax.f32 %v1510_v19, %v1511_v21  ;;  %v1492_v35 = vadd.f32 %v1951_v46, %v2546_v40  ;;  %v1439_v31 = vpop.f32.mrb[33].mxu1 }
 0x5de   : > { %v1527_v60 = vrot.slane %v1526_v36, 2  ;;  %v1490_v55 = vadd.f32 %v1439_v31, %v2549_v2  ;;  %v1952_v8 = vpop.f32.mrb[34].mxu1  ;;  %v1521_v48 = vmax.f32 %v1519_v4, %v1520_v3 }
 0x5df   : > { %v1507_v9 = vmax.f32 %v1505_v63, %v1506_v5  ;;  %v1513_v6 = vrot.slane %v1512_v26, 2  ;;  %v1545_v20 = vsel %vm1502_vm5, %v1492_v35, -inf  ;;  %v1493_v15 = vadd.f32 %v1952_v8, %v2553_v7  ;;  %v1442_v16 = vpop.f32.mrb[35].mxu1 }
 0x5e0   : > { %v1546_v45 = vrot.slane %v1545_v20, 4  ;;  %v1531_v23 = vsel %vm1502_vm5, %v1490_v55, -inf  ;;  %v1528_v28 = vmax.f32 %v1526_v36, %v1527_v60  ;;  %v1491_v54 = vadd.f32 %v1442_v16, %v2558_v13 }
 0x5e1   : > { %v1508_v25 = vrot.slane %v1507_v9, 1  ;;  %v1514_v49 = vmax.f32 %v1512_v26, %v1513_v6  ;;  %v1532_v27 = vrot.slane %v1531_v23, 4  ;;  %v1552_v40 = vsel %vm1502_vm5, %v1493_v15, -inf }
 0x5e2   : > { %v1547_v59 = vmax.f32 %v1545_v20, %v1546_v45  ;;  %v1553_v2 = vrot.slane %v1552_v40, 4  ;;  %v1522_v41 = vrot.slane %v1521_v48, 1  ;;  %v1538_v53 = vsel %vm1502_vm5, %v1491_v54, -inf }
 0x5e3   : > { %v1515_v32 = vrot.slane %v1514_v49, 1  ;;  %v1533_v57 = vmax.f32 %v1531_v23, %v1532_v27  ;;  %v1509_v39 = vmax.f32 %v1507_v9, %v1508_v25  ;;  %v1529_v56 = vrot.slane %v1528_v28, 1 }
 0x5e4   : > { %v1548_v7 = vrot.slane %v1547_v59, 2  ;;  %v1554_v58 = vmax.f32 %v1552_v40, %v1553_v2  ;;  %v1955_v37 = vpop.f32.mrb[36].mxu1  ;;  %v1539_v11 = vrot.slane %v1538_v53, 4 }
 0x5e5   : > { %v1516_v62 = vmax.f32 %v1514_v49, %v1515_v32  ;;  %v1496_v1 = vadd.f32 %v1955_v37, %v2568_v12  ;;  %v1455_v42 = vpop.f32.mrb[37].mxu1  ;;  %v1534_v43 = vrot.slane %v1533_v57, 2  ;;  %v1523_v12 = vmax.f32 %v1521_v48, %v1522_v41 }
 0x5e6   : > { %v1494_v44 = vadd.f32 %v1455_v42, %v2571_v24  ;;  %v1956_v38 = vpop.f32.mrb[38].mxu1  ;;  %v2640_v10 = vmax.f32 %v1547_v59, %v1548_v7  ;;  %v1555_v51 = vrot.slane %v1554_v58, 2  ;;  %v1540_v22 = vmax.f32 %v1538_v53, %v1539_v11 }
 0x5e7   : > { %v1632_v13 = vsel %vm1631_vm6, %v1516_v62, %v1509_v39  ;;  %v1573_v47 = vsel %vm1502_vm5, %v1496_v1, -inf  ;;  %v1497_v17 = vadd.f32 %v1956_v38, %v2575_v29  ;;  %v1458_v50 = vpop.f32.mrb[39].mxu1  ;;  %v1530_v33 = vmax.f32 %v1528_v28, %v1529_v56 }
 0x5e8   : > { %v1574_v52 = vrot.slane %v1573_v47, 4  ;;  %v1559_v61 = vsel %vm1502_vm5, %v1494_v44, -inf  ;;  %v1495_v24 = vadd.f32 %v1458_v50, %v2580_v30  ;;  %v1535_v19 = vmax.f32 %v1533_v57, %v1534_v43 }
 0x5e9   : > { %v1580_v4 = vsel %vm1502_vm5, %v1497_v17, -inf  ;;  %v1541_v63 = vrot.slane %v1540_v22, 2  ;;  %v1550_v3 = vrot.slane %v2640_v10, 1  ;;  %v1560_v29 = vrot.slane %v1559_v61, 4 }
 0x5ea   : > { %v1575_v21 = vmax.f32 %v1573_v47, %v1574_v52  ;;  %v1581_v36 = vrot.slane %v1580_v4, 4  ;;  %v1566_v46 = vsel %vm1502_vm5, %v1495_v24, -inf  ;;  %v1556_v5 = vmax.f32 %v1554_v58, %v1555_v51 }
 0x5eb   : > { %v1542_v26 = vmax.f32 %v1540_v22, %v1541_v63  ;;  %v1567_v31 = vrot.slane %v1566_v46, 4  ;;  %v1561_v55 = vmax.f32 %v1559_v61, %v1560_v29  ;;  %v1634_v6 = vsel %vm1633_vm7, %v1523_v12, %v1632_v13 }
 0x5ec   : > { %v1576_v35 = vrot.slane %v1575_v21, 2  ;;  %v1959_v60 = vpop.f32.mrb[40].mxu1  ;;  %v1582_v8 = vmax.f32 %v1580_v4, %v1581_v36  ;;  %v1536_v20 = vrot.slane %v1535_v19, 1  ;;  %v1557_v28 = vrot.slane %v1556_v5, 1 }
 0x5ed   : > { %v1500_v30 = vadd.f32 %v1959_v60, %v2590_v34  ;;  %v1471_v9 = vpop.f32.mrb[41].mxu1  ;;  %v1568_v16 = vmax.f32 %v1566_v46, %v1567_v31  ;;  %v1562_v23 = vrot.slane %v1561_v55, 2  ;;  %v1543_v34 = vrot.slane %v1542_v26, 1 }
 0x5ee   : > { %v1577_v15 = vmax.f32 %v1575_v21, %v1576_v35  ;;  %v1498_v48 = vadd.f32 %v1471_v9, %v2593_v14  ;;  %v1960_v45 = vpop.f32.mrb[42].mxu1  ;;  %v1583_v25 = vrot.slane %v1582_v8, 2  ;;  %v1537_v41 = vmax.f32 %v1535_v19, %v1536_v20 }
 0x5ef   : > { %v1601_v49 = vsel %vm1502_vm5, %v1500_v30, -inf  ;;  %v1501_v27 = vadd.f32 %v1960_v45, %v2597_v18  ;;  %v1474_v40 = vpop.f32.mrb[43].mxu1  ;;  %v1569_v59 = vrot.slane %v1568_v16, 2  ;;  %v1563_v32 = vmax.f32 %v1561_v55, %v1562_v23 }
 0x5f0   : > { %v1602_v2 = vrot.slane %v1601_v49, 4  ;;  %v1584_v57 = vmax.f32 %v1582_v8, %v1583_v25  ;;  %v1587_v54 = vsel %vm1502_vm5, %v1498_v48, -inf  ;;  %v1578_v39 = vrot.slane %v1577_v15, 1 }
 0x5f1   : > { %v1608_v14 = vsel %vm1502_vm5, %v1501_v27, -inf  ;;  %v1570_v7 = vmax.f32 %v1568_v16, %v1569_v59  ;;  %v1588_v37 = vrot.slane %v1587_v54, 4  ;;  %v1564_v62 = vrot.slane %v1563_v32, 1 }
 0x5f2   : > { %v1603_v58 = vmax.f32 %v1601_v49, %v1602_v2  ;;  %v1609_v18 = vrot.slane %v1608_v14, 4  ;;  %v1499_v53 = vadd.f32 %v1474_v40, %v2602_v0  ;;  %v1544_v1 = vmax.f32 %v1542_v26, %v1543_v34 }
 0x5f3   : > { %v1571_v42 = vrot.slane %v1570_v7, 1  ;;  %v1589_v56 = vmax.f32 %v1587_v54, %v1588_v37  ;;  %v1636_v43 = vsel %vm1635_vm8, %v1530_v33, %v1634_v6  ;;  %v1585_v11 = vrot.slane %v1584_v57, 1 }
 0x5f4   : > { %v1604_v44 = vrot.slane %v1603_v58, 2  ;;  %v1610_v38 = vmax.f32 %v1608_v14, %v1609_v18  ;;  %v1594_v13 = vsel %vm1502_vm5, %v1499_v53, -inf  ;;  %v1565_v47 = vmax.f32 %v1563_v32, %v1564_v62 }
 0x5f5   : > { %v1572_v17 = vmax.f32 %v1570_v7, %v1571_v42  ;;  %v1590_v50 = vrot.slane %v1589_v56, 2  ;;  %v1595_v51 = vrot.slane %v1594_v13, 4  ;;  %v1551_v22 = vmax.f32 %v2640_v10, %v1550_v3 }
 0x5f6   : > { %v1579_v52 = vmax.f32 %v1577_v15, %v1578_v39  ;;  %v1611_v12 = vrot.slane %v1610_v38, 2  ;;  %v1638_v0 = vsel %vm1637_vm9, %v1537_v41, %v1636_v43  ;;  %v1558_v33 = vmax.f32 %v1556_v5, %v1557_v28 }
 0x5f7   : > { %v1645_v61 = vsel %vm1631_vm6, %v1572_v17, %v1565_v47  ;;  %v1591_v4 = vmax.f32 %v1589_v56, %v1590_v50  ;;  %v1596_v24 = vmax.f32 %v1594_v13, %v1595_v51  ;;  %v1586_v19 = vmax.f32 %v1584_v57, %v1585_v11 }
 0x5f8   : > { %v1605_v63 = vmax.f32 %v1603_v58, %v1604_v44  ;;  %v1640_v21 = vsel %vm1639_vm10, %v1544_v1, %v1638_v0  ;;  %v1646_v29 = vsel %vm1633_vm7, %v1579_v52, %v1645_v61  ;;  %v1612_v46 = vmax.f32 %v1610_v38, %v1611_v12 }
 0x5f9   : > { %v1592_v36 = vrot.slane %v1591_v4, 1  ;;  %v1597_v26 = vrot.slane %v1596_v24, 2  ;;  %v1642_v10 = vsel %vm1641_vm11, %v1551_v22, %v1640_v21  ;;  %v1647_v35 = vsel %vm1635_vm8, %v1586_v19, %v1646_v29 }
 0x5fa   : > { %v1644_v3 = vsel %vm1643_vm12, %v1558_v33, %v1642_v10  ;;  %v1606_v5 = vrot.slane %v1605_v63, 1  ;;  %v1613_v55 = vrot.slane %v1612_v46, 1 }
 0x5fb   : > { %v1593_v31 = vmax.f32 %v1591_v4, %v1592_v36  ;;  %v1598_v60 = vmax.f32 %v1596_v24, %v1597_v26  ;;  %1652 = vrot.lane.b32.xlu0 %v1644_v3, %s2096_s26 }
 0x5fc   : > { %v1607_v6 = vmax.f32 %v1605_v63, %v1606_v5  ;;  %v1614_v20 = vmax.f32 %v1612_v46, %v1613_v55 }
 0x5fd   : > { %v1599_v8 = vrot.slane %v1598_v60, 1  ;;  %v1648_v30 = vsel %vm1637_vm9, %v1593_v31, %v1647_v35 }
 0x5ff   : > { %v1600_v9 = vmax.f32 %v1598_v60, %v1599_v8 }
 0x601   : > { %v1649_v15 = vsel %vm1639_vm10, %v1600_v9, %v1648_v30 }
 0x602   : > { %v1650_v16 = vsel %vm1641_vm11, %v1607_v6, %v1649_v15 }
 0x603   : > { %v1651_v48 = vsel %vm1643_vm12, %v1614_v20, %v1650_v16 }
 0x604   : > { %1654 = vrot.lane.b32.xlu1 %v1651_v48, %s2096_s26 }
 0x66d   : > { %v1653_v45 = vpop.permute.xlu0 %1652 }
 0x66e   : > { %1659 = vst.msk [vmem:[%s261_s9] sm:$0xff] %vm1658_vm13, %v1653_v45 }
 0x676   : > { %v1655_v23 = vpop.permute.xlu1 %1654 }
 0x677   : > { %1660 = vst.msk [vmem:[%s261_s9 + $0x8] sm:$0xff] %vm1658_vm13, %v1655_v23 }
 0x678   : > { %2039 = shalt.err (!%p2036_p4)
}
 0x679   : > { %s2040_s19 = scalar_lea.hbm %s2678_s14, 256  ;;  %s2044_s28 = scalar_lea.hbm %s2727_s6, 512 }
 0x67a   : > { %p2041_p7 = scmp.ne.s32.totalorder %s2678_s14, %s2040_s19  ;;  %p2045_p10 = scmp.lt.u32.totalorder %s2678_s14, %s2727_s6 }
 0x67b   : > { %p2046_p11 = scmp.lt.u32.totalorder %s2044_s28, %s2040_s19  ;;  %p2048_p13 = scmp.lt.u32.totalorder %s2040_s19, %s2678_s14 }
 0x67c   : > { %p2042_p8 = pnand %p2041_p7, %p2173_p5 }
 0x67d   : > { %p2047_p12 = por %p2046_p11, %p2045_p10 }
 0x67e   : > { %p2043_p9 = pneg %p2042_p8 }
 0x67f   : > { %p2049_p0 = por %p2048_p13, %p2047_p12 }
 0x681   : > { %p2050_p1 = pnand %p2049_p0, %p2043_p9 }
 0x683   : > { %2053 = shalt.err (!%p2050_p1)
}
 0x684   : > { %s2098_s11 = smov 128   ;;  %s2099_s12 = smov 8  }
 0x685   : > { %1969 = dma.vmem_to_hbm [thread:$0]  (%p2173_p5), %s2673_s10, 256, %s2678_s14, %s2680_s15, %s2098_s11, %s2098_s11, %s2099_s12  }
 0x686 PF: > { %p1975_p2 = scmp.ge.s32.totalorder %s2088_s24, 2  ;;  %s1690_s13 = sand.u32 1, %s2076_s21  }
 0x687   : > { %s1691_s16 = scalar_lea.sflag [#allocation3], %s1690_s13 }
 0x688   : > { %p1972_p3 = pnand %p1975_p2, %p2177_p6 }
 0x68a   : > { %2071 = dma.done.wait (!%p1972_p3), %s1691_s16, 256  }
 0x68b   : > { %2073 = vsyncadd (!%p1972_p3), %s1691_s16, 4294967040  ;;  %p16_p4 = scmp.ge.s32.totalorder %s2160_s27, 4   ;;  %s2730_s21 = smov %s2080_s22 }
 0x68c   : > { %s2731_s22 = smov %s2084_s23  ;;  %s2732_s23 = smov %s2171_s30 }
 0x68d   : > { %s2733_s24 = smov %s2160_s27  ;;  %18 = sbr.rel (!%p16_p4) target bundleno = 3 (0x3), region = 85 }
 0x694   :  { %1696 = vsyncpa [#allocation3], 1 }
 0x695   :  { %1698 = vsyncpa [#allocation3 + $0x1], 1 }

</bundles_post_ra>
